<compile_context>
chip_gen: v6e
topology: v6e:2x2x1
jax: 0.10.0
libtpu: 0.0.40
codegen_flags: <defaults>
</compile_context>

<pallas_src>
import functools

import jax
import jax.numpy as jnp
from jax.experimental import pallas as pl
from jax.experimental.pallas import tpu as pltpu

_MIB = 1024 * 1024
_VMEM_BUDGET = 44 * _MIB  # pipelined working-set target (v7x physical = 64 MiB)


def _round_up(x, m):
    return ((x + m - 1) // m) * m


def _vmem_bytes(bm, dim, hidden, x_bytes, out_bytes, w_bytes):
    """Rough pipelined working-set estimate for one grid step."""
    act = 2 * bm * dim * x_bytes            # x tile, double-buffered
    act += 2 * bm * dim * out_bytes         # att tile, double-buffered
    act += bm * dim * 4 + bm * hidden * 4   # f32 z / h intermediates
    wts = 2 * dim * hidden * w_bytes + (hidden + dim) * 4  # single-buffered
    return act + wts


def _attn_fc_kernel(x_ref, w1_ref, b1_ref, w2_ref, b2_ref, o_ref, *, mxu_dtype):
    # Fused: matmul -> bias -> relu -> matmul -> bias -> sigmoid, all in VMEM.
    x = x_ref[...].astype(mxu_dtype)
    # Layer 1: (bm, dim) @ (dim, hidden), f32 accumulate on the MXU.
    h = jnp.dot(x, w1_ref[...].astype(mxu_dtype),
                preferred_element_type=jnp.float32)
    h = jnp.maximum(h + b1_ref[...].astype(jnp.float32), 0.0)        # f32 VPU
    # Layer 2: (bm, hidden) @ (hidden, dim), f32 accumulate on the MXU.
    z = jnp.dot(h.astype(mxu_dtype), w2_ref[...].astype(mxu_dtype),
                preferred_element_type=jnp.float32)
    z = z + b2_ref[...].astype(jnp.float32)
    o_ref[...] = jax.nn.sigmoid(z).astype(o_ref.dtype)               # f32 EUP


@functools.partial(jax.jit, static_argnames=("block_rows", "mxu_dtype"))
def attention_layer_fc(inp, w1, b1, w2, b2, *, block_rows=1024,
                       mxu_dtype=jnp.bfloat16):
    """inp: (B, dim); returns (B, dim, 1) like att.unsqueeze(-1).

    Output dtype follows inp.dtype (pass bf16 activations for half the HBM
    traffic on both the load and the store). mxu_dtype controls the matmul
    operand precision (accumulation is always f32); use jnp.float32 for an
    exact match against an f32 reference.
    """
    B, dim = inp.shape
    hidden = w1.shape[1]
    assert w1.shape == (dim, hidden)
    assert w2.shape == (hidden, dim)

    out_dtype = inp.dtype

    # Weights: store in the MXU dtype when it is narrower (tiny one-time cast;
    # halves their DMA + single-buffered VMEM footprint). Biases stay f32.
    if jnp.dtype(mxu_dtype).itemsize < jnp.dtype(w1.dtype).itemsize:
        w_dtype = jnp.dtype(mxu_dtype)
    else:
        w_dtype = jnp.dtype(w1.dtype)
    w1c = w1.astype(w_dtype)
    w2c = w2.astype(w_dtype)
    b1c = b1.reshape(1, hidden).astype(jnp.float32)
    b2c = b2.reshape(1, dim).astype(jnp.float32)

    x_bytes = jnp.dtype(inp.dtype).itemsize
    out_bytes = jnp.dtype(out_dtype).itemsize
    w_bytes = w_dtype.itemsize

    # Batch tile: aim for >= ~8 grid steps (keeps double-buffering busy and
    # lets v7x shard over its 2 TensorCores), rows a multiple of 8 (sublane),
    # capped by block_rows / B, then shrunk until the pipelined working set
    # fits the VMEM budget.
    bm = max(256, _round_up(pl.cdiv(B, 8), 128))
    bm = min(bm, _round_up(block_rows, 8), _round_up(B, 8))
    bm = _round_up(bm, 8)
    while bm > 256 and _vmem_bytes(bm, dim, hidden, x_bytes, out_bytes,
                                   w_bytes) > _VMEM_BUDGET:
        bm = _round_up(bm // 2, 8)

    working_set = _vmem_bytes(bm, dim, hidden, x_bytes, out_bytes, w_bytes)
    vmem_limit = int(min(56 * _MIB, max(16 * _MIB, working_set + 8 * _MIB)))

    grid = (pl.cdiv(B, bm),)  # ragged last block handled by Pallas masking
    kernel = functools.partial(_attn_fc_kernel, mxu_dtype=mxu_dtype)
    resident = pl.Buffered(1)  # grid-invariant operands: single-buffer

    att = pl.pallas_call(
        kernel,
        out_shape=jax.ShapeDtypeStruct((B, dim), out_dtype),
        grid=grid,
        in_specs=[
            # x: one batch tile per grid step (pipelined HBM<->VMEM).
            pl.BlockSpec((bm, dim), lambda i: (i, 0)),
            # Weights / biases: constant block index -> VMEM-resident,
            # single-buffered (no benefit from a second buffer).
            pl.BlockSpec((dim, hidden), lambda i: (0, 0), pipeline_mode=resident),
            pl.BlockSpec((1, hidden), lambda i: (0, 0), pipeline_mode=resident),
            pl.BlockSpec((hidden, dim), lambda i: (0, 0), pipeline_mode=resident),
            pl.BlockSpec((1, dim), lambda i: (0, 0), pipeline_mode=resident),
        ],
        out_specs=pl.BlockSpec((bm, dim), lambda i: (i, 0)),
        compiler_params=pltpu.CompilerParams(
            # Batch axis is fully independent: lets v7x shard it over 2 TCs.
            dimension_semantics=("parallel",),
            vmem_limit_bytes=vmem_limit,
        ),
    )(inp, w1c, b1c, w2c, b2c)

    return att[..., None]  # unsqueeze(-1): shape metadata only


def _reference(inp, w1, b1, w2, b2):
    h = jnp.maximum(inp @ w1 + b1, 0.0)
    att = jax.nn.sigmoid(h @ w2 + b2)
    return att[..., None]


if __name__ == "__main__":
    # Small shapes consistent with the module: dim must be divisible by r=16.
    B, dim, r = 8, 64, 16
    hidden = dim // r  # 4

    key = jax.random.PRNGKey(0)
    k_x, k_w1, k_b1, k_w2, k_b2 = jax.random.split(key, 5)

    inp = jax.random.normal(k_x, (B, dim), dtype=jnp.float32)
    # Deterministic parameter init (PyTorch-Linear-like uniform scale),
    # stored transposed ((in, out)) relative to nn.Linear's (out, in).
    w1 = jax.random.uniform(k_w1, (dim, hidden), jnp.float32, -1.0, 1.0) / jnp.sqrt(dim)
    b1 = jax.random.uniform(k_b1, (hidden,), jnp.float32, -1.0, 1.0) / jnp.sqrt(dim)
    w2 = jax.random.uniform(k_w2, (hidden, dim), jnp.float32, -1.0, 1.0) / jnp.sqrt(hidden)
    b2 = jax.random.uniform(k_b2, (dim,), jnp.float32, -1.0, 1.0) / jnp.sqrt(hidden)

    ref = _reference(inp, w1, b1, w2, b2)

    # Exact f32 MXU path: tight match against the reference.
    out_f32 = jax.block_until_ready(
        attention_layer_fc(inp, w1, b1, w2, b2, mxu_dtype=jnp.float32))
    assert out_f32.shape == (B, dim, 1), out_f32.shape
    assert jnp.allclose(out_f32, ref, atol=1e-5, rtol=1e-5)

    # Default path: bf16 MXU operands, f32 accumulation (sigmoid gate is
    # insensitive to operand rounding).
    out = jax.block_until_ready(attention_layer_fc(inp, w1, b1, w2, b2))
    assert out.shape == (B, dim, 1), out.shape
    assert out.dtype == inp.dtype
    assert jnp.allclose(out, ref, atol=3e-2, rtol=3e-2)

    # bf16 activations in HBM: caller supplies bf16, output comes back bf16
    # (half-width on both the load and the store).
    out_bf16 = jax.block_until_ready(
        attention_layer_fc(inp.astype(jnp.bfloat16), w1, b1, w2, b2))
    assert out_bf16.shape == (B, dim, 1), out_bf16.shape
    assert out_bf16.dtype == jnp.bfloat16
    assert jnp.allclose(out_bf16.astype(jnp.float32), ref, atol=5e-2, rtol=5e-2)

    print("KERNEL_OK")
</pallas_src>

<mosaic_0001>
module attributes {stable_mosaic.version = 11 : i64} {
  func.func @_attn_fc_kernel(%arg0: i32, %arg1: memref<8x64xf32, #tpu.memory_space<vmem>>, %arg2: memref<64x4xf32, #tpu.memory_space<vmem>>, %arg3: memref<1x4xf32, #tpu.memory_space<vmem>>, %arg4: memref<4x64xf32, #tpu.memory_space<vmem>>, %arg5: memref<1x64xf32, #tpu.memory_space<vmem>>, %arg6: memref<8x64xf32, #tpu.memory_space<vmem>>) attributes {dimension_semantics = [#tpu.dimension_semantics<parallel>], iteration_bounds = array<i64: 1>, scalar_prefetch = 0 : i64, scratch_operands = 0 : i64, tpu.core_type = #tpu.core_type<tc>, window_params = [{transform_indices = @transform_0, window_bounds = array<i64: 8, 64>}, {pipeline_mode = #tpu.pipeline_mode<synchronous>, transform_indices = @transform_1, window_bounds = array<i64: 64, 4>}, {pipeline_mode = #tpu.pipeline_mode<synchronous>, transform_indices = @transform_2, window_bounds = array<i64: 1, 4>}, {pipeline_mode = #tpu.pipeline_mode<synchronous>, transform_indices = @transform_3, window_bounds = array<i64: 4, 64>}, {pipeline_mode = #tpu.pipeline_mode<synchronous>, transform_indices = @transform_4, window_bounds = array<i64: 1, 64>}, {transform_indices = @transform_5, window_bounds = array<i64: 8, 64>}]} {
    %c0 = arith.constant 0 : index
    %c0_0 = arith.constant 0 : index
    %0 = vector.load %arg1[%c0, %c0_0] : memref<8x64xf32, #tpu.memory_space<vmem>>, vector<8x64xf32>
    %c0_1 = arith.constant 0 : index
    %c0_2 = arith.constant 0 : index
    %1 = vector.load %arg2[%c0_1, %c0_2] : memref<64x4xf32, #tpu.memory_space<vmem>>, vector<64x4xf32>
    %cst = arith.constant dense<0.000000e+00> : vector<8x4xf32>
    %2 = tpu.matmul %0, %1, %cst {dimension_numbers = #tpu.dot_dimension_numbers<[1], [0], [0], [1], [0, 0, 1, 1], [], []>} : vector<8x64xf32>, vector<64x4xf32>, vector<8x4xf32> -> vector<8x4xf32>
    %c0_3 = arith.constant 0 : index
    %c0_4 = arith.constant 0 : index
    %3 = vector.load %arg3[%c0_3, %c0_4] : memref<1x4xf32, #tpu.memory_space<vmem>>, vector<1x4xf32>
    %4 = vector.broadcast %3 : vector<1x4xf32> to vector<8x4xf32>
    %5 = arith.addf %2, %4 : vector<8x4xf32>
    %cst_5 = arith.constant 0.000000e+00 : f32
    %6 = vector.broadcast %cst_5 : f32 to vector<8x4xf32>
    %7 = arith.maximumf %5, %6 : vector<8x4xf32>
    %c0_6 = arith.constant 0 : index
    %c0_7 = arith.constant 0 : index
    %8 = vector.load %arg4[%c0_6, %c0_7] : memref<4x64xf32, #tpu.memory_space<vmem>>, vector<4x64xf32>
    %cst_8 = arith.constant dense<0.000000e+00> : vector<8x64xf32>
    %9 = tpu.matmul %7, %8, %cst_8 {dimension_numbers = #tpu.dot_dimension_numbers<[1], [0], [0], [1], [0, 0, 1, 1], [], []>} : vector<8x4xf32>, vector<4x64xf32>, vector<8x64xf32> -> vector<8x64xf32>
    %c0_9 = arith.constant 0 : index
    %c0_10 = arith.constant 0 : index
    %10 = vector.load %arg5[%c0_9, %c0_10] : memref<1x64xf32, #tpu.memory_space<vmem>>, vector<1x64xf32>
    %11 = vector.broadcast %10 : vector<1x64xf32> to vector<8x64xf32>
    %12 = arith.addf %9, %11 : vector<8x64xf32>
    %13 = arith.negf %12 : vector<8x64xf32>
    %14 = math.exp %13 : vector<8x64xf32>
    %cst_11 = arith.constant 1.000000e+00 : f32
    %15 = vector.broadcast %cst_11 : f32 to vector<8x64xf32>
    %16 = arith.addf %15, %14 : vector<8x64xf32>
    %17 = arith.divf %15, %16 : vector<8x64xf32>
    %c0_12 = arith.constant 0 : index
    %c0_13 = arith.constant 0 : index
    %18 = vector.load %arg6[%c0_12, %c0_13] : memref<8x64xf32, #tpu.memory_space<vmem>>, vector<8x64xf32>
    tpu.vector_store %arg6[%c0_12, %c0_13], %17 {strides = array<i32>} : memref<8x64xf32, #tpu.memory_space<vmem>>, vector<8x64xf32>,
    return
  }
  func.func @transform_0(%arg0: i32) -> (i32, i32) {
    %c0_i32 = arith.constant 0 : i32
    %c0_i32_0 = arith.constant 0 : i32
    return %arg0, %c0_i32 : i32, i32
  }
  func.func @transform_1(%arg0: i32) -> (i32, i32) {
    %c0_i32 = arith.constant 0 : i32
    %c0_i32_0 = arith.constant 0 : i32
    %c0_i32_1 = arith.constant 0 : i32
    return %c0_i32, %c0_i32_0 : i32, i32
  }
  func.func @transform_2(%arg0: i32) -> (i32, i32) {
    %c0_i32 = arith.constant 0 : i32
    %c0_i32_0 = arith.constant 0 : i32
    %c0_i32_1 = arith.constant 0 : i32
    return %c0_i32, %c0_i32_0 : i32, i32
  }
  func.func @transform_3(%arg0: i32) -> (i32, i32) {
    %c0_i32 = arith.constant 0 : i32
    %c0_i32_0 = arith.constant 0 : i32
    %c0_i32_1 = arith.constant 0 : i32
    return %c0_i32, %c0_i32_0 : i32, i32
  }
  func.func @transform_4(%arg0: i32) -> (i32, i32) {
    %c0_i32 = arith.constant 0 : i32
    %c0_i32_0 = arith.constant 0 : i32
    %c0_i32_1 = arith.constant 0 : i32
    return %c0_i32, %c0_i32_0 : i32, i32
  }
  func.func @transform_5(%arg0: i32) -> (i32, i32) {
    %c0_i32 = arith.constant 0 : i32
    %c0_i32_0 = arith.constant 0 : i32
    return %arg0, %c0_i32 : i32, i32
  }
}

</mosaic_0001>

<bundles_post_ra>
// kernel: attention_layer_fc.1
= control target key start
LH: loop header
LB: loop body
LE: loop exit
PB: predicated region body
PF: predicated region fallthrough
CT: control target
= control target key end

     0   :  { %v289_v1 = vmov 0.0   ;;  %vm290_vm0 = vmmov 0   ;;  %s363_s0 = inlined_call_operand.vmem [shape: f32[8,64], index: 0, kind: input, shape index: {}]   ;;  %s364_s1 = inlined_call_operand.vmem [shape: f32[64,4], index: 1, kind: input, shape index: {}]   ;;  %s365_s2 = inlined_call_operand.vmem [shape: f32[1,4], index: 2, kind: input, shape index: {}]   ;;  %s366_s3 = inlined_call_operand.vmem [shape: f32[4,64], index: 3, kind: input, shape index: {}]   ;;  %s367_s4 = inlined_call_operand.vmem [shape: f32[1,64], index: 4, kind: input, shape index: {}]   ;;  %s368_s5 = inlined_call_operand.hbm [shape: f32[8,64], index: 5, kind: output, shape index: {}]  }
   0x1   :  { %v29_v0 = vld [vmem:[%s364_s1 + $0x38] sm:$0xff]  ;;  %236 = vmatprep.subr.mxu0 %v289_v1  ;;  %v28_v2 = vld [vmem:[%s364_s1 + $0x30] sm:$0xff]  ;;  %252 = vmatprep.mubr.msk.f32.mxu0 %vm290_vm0, %v289_v1  ;;  %v27_v3 = vld [vmem:[%s364_s1 + $0x28] sm:$0xff] }
   0x2   :  { %237 = vmatpush3.msra.mxu0 %v29_v0  ;;  %255 = vmatprep.subr.mxu1 %v289_v1 }
   0x3   :  { %238 = vmatprep.subr.mxu0 %v289_v1  ;;  %257 = vmatprep.mubr.msk.f32.mxu1 %vm290_vm0, %v289_v1 }
   0x4   :  { %10 = vsyncpa [#allocation3], 0  ;;  %239 = vmatpush3.msra.mxu0 %v28_v2  ;;  %v26_v4 = vld [vmem:[%s364_s1 + $0x20] sm:$0xff]  ;;  %v25_v5 = vld [vmem:[%s364_s1 + $0x18] sm:$0xff]  ;;  %vm37_vm1 = vcmask 523264   ;;  %vm124_vm2 = vcmask 1043456  }
   0x5   :  { %240 = vmatprep.subr.mxu0 %v289_v1  ;;  %v24_v6 = vld [vmem:[%s364_s1 + $0x10] sm:$0xff]  ;;  %v23_v7 = vld [vmem:[%s364_s1 + $0x8] sm:$0xff]  ;;  %v22_v8 = vld [vmem:[%s364_s1] sm:$0xff]  ;;  %vm120_vm3 = vcmask 31744  }
   0x6   :  { %241 = vmatpush3.msra.mxu0 %v27_v3  ;;  %v21_v9 = vld [vmem:[%s363_s0] sm:$0xff] }
   0x7   :  { %242 = vmatprep.subr.mxu0 %v289_v1  ;;  %v112_v10 = vld [vmem:[%s366_s3] sm:$0xf]  ;;  %s291_s3 = smov [#allocation2]  }
   0x8   :  { %243 = vmatpush3.msra.mxu0 %v26_v4  ;;  %256 = vmatpush3.msk.msra.mxu1 %vm124_vm2, %v112_v10  ;;  %v219_v11 = vld [vmem:[%s365_s2] ss:$0 sm:$0xff]  ;;  %s211_s2 = sshll.u32 %s291_s3, 4  ;;  %s212_s2 = int_to_ptr.vmem [resolvable:$true] %s211_s2 }
   0x9   :  { %244 = vmatprep.subr.mxu0 %v289_v1  ;;  %v221_v16 = vld [vmem:[%s367_s4] ss:$0 sm:$0xff]  ;;  %s267_s15 = scalar_lea.vmem %s212_s2, 128  ;;  %p272_p1 = scmp.lt.s32.totalorder %s212_s2, %s212_s2 }
   0xa   :  { %245 = vmatpush3.msra.mxu0 %v25_v5  ;;  %p268_p0 = scmp.ne.s32.totalorder %s212_s2, %s267_s15  ;;  %p273_p2 = scmp.lt.s32.totalorder %s267_s15, %s267_s15 }
   0xb   :  { %246 = vmatprep.subr.mxu0 %v289_v1 }
   0xc   :  { %247 = vmatpush3.msra.mxu0 %v24_v6  ;;  %p274_p3 = por %p273_p2, %p272_p1 }
   0xd   :  { %248 = vmatprep.subr.mxu0 %v289_v1 }
   0xe   :  { %249 = vmatpush3.msra.mxu0 %v23_v7  ;;  %p275_p4 = pnand %p274_p3, %p268_p0 }
   0xf   :  { %250 = vmatprep.subr.mxu0 %v289_v1 }
  0x10   :  { %251 = vmatpush3.msra.mxu0 %v22_v8 }
  0x11   :  { %253 = vmatmul.mubr.msk.f32.vlgmr.msra.gmra.mxu0 %vm37_vm1, %v21_v9 }
  0xd1   :  { %v107_v12 = vpop.f32.mrf.mxu0 }
  0xd2   :  { %v108_v13 = vadd.f32 %v219_v11, %v107_v12 }
  0xd3   :  { %v254_v14 = vpop.f32.mrf.mxu0 }
  0xd4   :  { %v111_v15 = vmax.f32 %v108_v13, 0.0 }
  0xd6   :  { %258 = vmatmul.mubr.msk.f32.vlgmr.msra.gmra.mxu1 %vm120_vm3, %v111_v15 }
 0x196   :  { %v194_v17 = vpop.f32.mrf.mxu1 }
 0x197   :  { %v195_v18 = vadd.f32 %v221_v16, %v194_v17 }
 0x198   :  { %v259_v19 = vpop.f32.mrf.mxu1 }
 0x199   :  { %v224_v20 = vmul.f32 -1.442695, %v195_v18 }
 0x19b   :  { %263 = vpow2.f32 %v224_v20 }
 0x1a8   :  { %v264_v21 = vpop.eup %263 }
 0x1a9   :  { %v201_v22 = vadd.f32 1.0, %v264_v21 }
 0x1ab   :  { %265 = vrcp.f32 %v201_v22 }
 0x1b8   :  { %v266_v23 = vpop.eup %265 }
 0x1b9   :  { %204 = vst.msk [vmem:[#allocation2] sm:$0xff] %vm37_vm1, %v266_v23 }
 0x1ba   :  { %278 = shalt.err (!%p275_p4)
}
 0x1bb   :  { %214 = dma.vmem_to_hbm [thread:$0]  %s212_s2, 128, %s368_s5, [#allocation3]  }
 0x1bc   :  { %287 = dma.done.wait [#allocation3], 128  }
 0x1bd   :  { %288 = vsyncadd [#allocation3], 4294967168 }
 0x1be   :  { %218 = vsyncpa [#allocation3], 1 }

</bundles_post_ra>
